<compile_context>
chip_gen: v5e
topology: v5e:2x2
jax: 0.10.0
libtpu: 0.0.40
codegen_flags: <defaults>
</compile_context>

<pallas_src>
import functools

import jax
import jax.numpy as jnp
from jax import lax
from jax.experimental import pallas as pl
from jax.experimental.pallas import tpu as pltpu

_SUBLANE = 8
_LANE = 128
_MAX_K_TILE = 2048                  # f32 lanes; keeps tiles MXU-friendly
_PER_BUF_BUDGET = 6 * 1024 * 1024   # bytes per streamed F tile (<= 3 live buffers)


def _round_up(x, m):
    return ((x + m - 1) // m) * m


def _choose_k_tile(mp, k128, itemsize):
    """Pick a 128-multiple K tile that minimizes padding and fits VMEM."""
    # Cap tile bytes so up to 3 in-flight buffers + (Mp,Mp) f32 accumulator
    # (+ resident target) stay within the scoped-VMEM default on v7x.
    cap = max(_LANE, (_PER_BUF_BUDGET // max(1, mp * itemsize)) // _LANE * _LANE)
    max_tile = min(_MAX_K_TILE, cap)
    if k128 <= max_tile:
        return k128
    n_tiles = -(-k128 // max_tile)                      # ceil-div
    return _round_up(-(-k128 // n_tiles), _LANE)        # near-even tiles, 128-aligned


# ---------------------------------------------------------------------------
# Kernels
# ---------------------------------------------------------------------------
def _gram_acc_kernel(f_ref, g_ref, acc_ref, *, scale):
    """Accumulate G += F_k @ F_k^T over K tiles; scale+store on last step."""
    k = pl.program_id(0)

    @pl.when(k == 0)
    def _():
        acc_ref[...] = jnp.zeros_like(acc_ref)

    f = f_ref[...]  # native dtype; MXU accumulates in f32
    acc_ref[...] += lax.dot_general(
        f, f,
        dimension_numbers=(((1,), (1,)), ((), ())),  # contract last dims: F @ F^T
        preferred_element_type=jnp.float32,
    )

    @pl.when(k == pl.num_programs(0) - 1)
    def _():
        g_ref[...] = acc_ref[...] * scale


def _style_loss_kernel(f_ref, tgt_ref, loss_ref, acc_ref, *, scale, inv_count):
    """Accumulate gram over K tiles; MSE vs. target in the finalize branch only."""
    k = pl.program_id(0)

    @pl.when(k == 0)
    def _():
        acc_ref[...] = jnp.zeros_like(acc_ref)

    f = f_ref[...]
    acc_ref[...] += lax.dot_general(
        f, f,
        dimension_numbers=(((1,), (1,)), ((), ())),
        preferred_element_type=jnp.float32,
    )

    @pl.when(k == pl.num_programs(0) - 1)
    def _():
        diff = acc_ref[...] * scale - tgt_ref[...].astype(jnp.float32)
        # Padded rows/cols are zero in both gram and target -> diff == 0 there,
        # so summing over the padded (Mp, Mp) block and dividing by the true
        # M*M count reproduces mse_loss over the unpadded gram exactly.
        loss_ref[0, 0] = jnp.sum(diff * diff) * inv_count


# ---------------------------------------------------------------------------
# Wrappers
# ---------------------------------------------------------------------------
def _features_padded(x):
    """NCHW -> (M, K) features, zero-padded to TPU-friendly (Mp, Kp)."""
    a, b, c, d = x.shape
    m, k = a * b, c * d
    f = x.reshape(m, k)
    mp = _round_up(m, _SUBLANE)
    k128 = _round_up(k, _LANE)
    k_tile = _choose_k_tile(mp, k128, jnp.dtype(x.dtype).itemsize)
    kp = _round_up(k128, k_tile)
    if (mp, kp) != (m, k):
        f = jnp.pad(f, ((0, mp - m), (0, kp - k)))
    return f, m, k, mp, kp, k_tile


def _f_block_spec(mp, k_tile, nkt):
    kwargs = {}
    if nkt >= 3:
        # Triple-buffer the streamed K tiles: with small M the per-tile matmul
        # is short relative to the tile DMA.
        kwargs["pipeline_mode"] = pl.Buffered(3)
    return pl.BlockSpec((mp, k_tile), lambda kk: (0, kk), **kwargs)


def _gram_padded(x):
    """Padded gram matrix (Mp, Mp) in f32, plus the true M."""
    f, m, k, mp, kp, k_tile = _features_padded(x)
    scale = 1.0 / float(m * k)
    nkt = kp // k_tile
    g = pl.pallas_call(
        functools.partial(_gram_acc_kernel, scale=scale),
        out_shape=jax.ShapeDtypeStruct((mp, mp), jnp.float32),
        grid_spec=pltpu.PrefetchScalarGridSpec(
            num_scalar_prefetch=0,
            grid=(nkt,),
            in_specs=[_f_block_spec(mp, k_tile, nkt)],
            out_specs=pl.BlockSpec((mp, mp), lambda kk: (0, 0)),
            scratch_shapes=[pltpu.VMEM((mp, mp), jnp.float32)],
        ),
        compiler_params=pltpu.CompilerParams(
            dimension_semantics=("arbitrary",)),
    )(f)
    return g, m


def gram_matrix(x):
    """Exact PyTorch gram_matrix: returns (a*b, a*b) / (a*b*c*d)."""
    g, m = _gram_padded(x)
    return g[:m, :m]


def make_style_loss(target_feature):
    """Mirrors StyleLoss.__init__: precompute detached target gram (padded)."""
    target_g, m = _gram_padded(target_feature)  # (Mp, Mp) f32, padded region is 0
    target_g = lax.stop_gradient(target_g)
    inv_count = 1.0 / float(m * m)

    def forward(x):
        f, m2, k, mp, kp, k_tile = _features_padded(x)
        assert m2 == m, "input must have the same a*b as the target feature"
        scale = 1.0 / float(m2 * k)
        nkt = kp // k_tile
        loss = pl.pallas_call(
            functools.partial(_style_loss_kernel, scale=scale,
                              inv_count=inv_count),
            out_shape=jax.ShapeDtypeStruct((1, 1), jnp.float32),
            grid_spec=pltpu.PrefetchScalarGridSpec(
                num_scalar_prefetch=0,
                grid=(nkt,),
                in_specs=[
                    _f_block_spec(mp, k_tile, nkt),
                    pl.BlockSpec((mp, mp), lambda kk: (0, 0)),  # target, resident
                ],
                out_specs=pl.BlockSpec(
                    (1, 1), lambda kk: (0, 0),
                    memory_space=pltpu.MemorySpace.SMEM),
                scratch_shapes=[pltpu.VMEM((mp, mp), jnp.float32)],
            ),
            compiler_params=pltpu.CompilerParams(
                dimension_semantics=("arbitrary",)),
        )(f, target_g)
        # PyTorch forward() returns the input unchanged; loss rides on the side.
        return x, loss[0, 0]

    return forward


# ---------------------------------------------------------------------------
# Pure-JAX reference for a sanity check
# ---------------------------------------------------------------------------
def _gram_ref(x):
    a, b, c, d = x.shape
    f = x.reshape(a * b, c * d).astype(jnp.float32)
    return (f @ f.T) / (a * b * c * d)


def _style_loss_ref(x, target_feature):
    tgt = _gram_ref(target_feature)
    g = _gram_ref(x)
    return jnp.mean((g - tgt) ** 2)


# ---------------------------------------------------------------------------
if __name__ == "__main__":
    key = jax.random.PRNGKey(0)
    k1, k2 = jax.random.split(key)

    # Small NCHW shapes: batch=2, channels=4, spatial=16x16
    a, b, c, d = 2, 4, 16, 16
    target_feature = jax.random.normal(k1, (a, b, c, d), dtype=jnp.float32)
    x = jax.random.normal(k2, (a, b, c, d), dtype=jnp.float32)

    style_loss = make_style_loss(target_feature)
    out, loss = style_loss(x)
    out = jax.block_until_ready(out)
    loss = jax.block_until_ready(loss)

    # Correctness checks against pure-JAX reference
    ref_loss = _style_loss_ref(x, target_feature)
    assert out.shape == x.shape and out.dtype == x.dtype
    assert jnp.allclose(out, x), "forward must return input unchanged"
    assert jnp.allclose(loss, ref_loss, rtol=1e-5, atol=1e-6), (loss, ref_loss)

    # Also check the standalone gram_matrix wrapper
    g = jax.block_until_ready(gram_matrix(x))
    assert jnp.allclose(g, _gram_ref(x), rtol=1e-5, atol=1e-6)

    print("KERNEL_OK")
</pallas_src>

<mosaic_0001>
module attributes {stable_mosaic.version = 11 : i64} {
  func.func @_gram_acc_kernel(%arg0: i32, %arg1: memref<8x256xf32, #tpu.memory_space<vmem>>, %arg2: memref<8x8xf32, #tpu.memory_space<vmem>>, %arg3: memref<8x8xf32, #tpu.memory_space<vmem>>) attributes {dimension_semantics = [#tpu.dimension_semantics<arbitrary>], iteration_bounds = array<i64: 1>, scalar_prefetch = 0 : i64, scratch_operands = 1 : i64, tpu.core_type = #tpu.core_type<tc>, window_params = [{transform_indices = @transform_0, window_bounds = array<i64: 8, 256>}, {pipeline_mode = #tpu.pipeline_mode<synchronous>, transform_indices = @transform_1, window_bounds = array<i64: 8, 8>}]} {
    %c0_i32 = arith.constant 0 : i32
    %0 = arith.cmpi eq, %arg0, %c0_i32 : i32
    %1 = arith.extui %0 : i1 to i32
    %c0_i32_0 = arith.constant 0 : i32
    %2 = arith.cmpi ne, %1, %c0_i32_0 : i32
    scf.if %2 {
      %cst_8 = arith.constant 0.000000e+00 : f32
      %11 = vector.broadcast %cst_8 : f32 to vector<8x8xf32>
      %c0_9 = arith.constant 0 : index
      %c0_10 = arith.constant 0 : index
      %12 = vector.load %arg3[%c0_9, %c0_10] : memref<8x8xf32, #tpu.memory_space<vmem>>, vector<8x8xf32>
      tpu.vector_store %arg3[%c0_9, %c0_10], %11 {strides = array<i32>} : memref<8x8xf32, #tpu.memory_space<vmem>>, vector<8x8xf32>,
    } else {
    }
    %c0 = arith.constant 0 : index
    %c0_1 = arith.constant 0 : index
    %3 = vector.load %arg1[%c0, %c0_1] : memref<8x256xf32, #tpu.memory_space<vmem>>, vector<8x256xf32>
    %c0_2 = arith.constant 0 : index
    %c0_3 = arith.constant 0 : index
    %4 = vector.load %arg3[%c0_2, %c0_3] : memref<8x8xf32, #tpu.memory_space<vmem>>, vector<8x8xf32>
    %cst = arith.constant dense<0.000000e+00> : vector<8x8xf32>
    %5 = tpu.matmul %3, %3, %cst {dimension_numbers = #tpu.dot_dimension_numbers<[1], [1], [0], [0], [0, 0, 1, 0], [], []>} : vector<8x256xf32>, vector<8x256xf32>, vector<8x8xf32> -> vector<8x8xf32>
    %6 = arith.addf %4, %5 : vector<8x8xf32>
    %c0_4 = arith.constant 0 : index
    %c0_5 = arith.constant 0 : index
    %7 = vector.load %arg3[%c0_4, %c0_5] : memref<8x8xf32, #tpu.memory_space<vmem>>, vector<8x8xf32>
    tpu.vector_store %arg3[%c0_4, %c0_5], %6 {strides = array<i32>} : memref<8x8xf32, #tpu.memory_space<vmem>>, vector<8x8xf32>,
    %c0_i32_6 = arith.constant 0 : i32
    %8 = arith.cmpi eq, %arg0, %c0_i32_6 : i32
    %9 = arith.extui %8 : i1 to i32
    %c0_i32_7 = arith.constant 0 : i32
    %10 = arith.cmpi ne, %9, %c0_i32_7 : i32
    scf.if %10 {
      %c0_8 = arith.constant 0 : index
      %c0_9 = arith.constant 0 : index
      %11 = vector.load %arg3[%c0_8, %c0_9] : memref<8x8xf32, #tpu.memory_space<vmem>>, vector<8x8xf32>
      %cst_10 = arith.constant 4.8828125E-4 : f32
      %12 = vector.broadcast %cst_10 : f32 to vector<8x8xf32>
      %13 = arith.mulf %11, %12 : vector<8x8xf32>
      %c0_11 = arith.constant 0 : index
      %c0_12 = arith.constant 0 : index
      %14 = vector.load %arg2[%c0_11, %c0_12] : memref<8x8xf32, #tpu.memory_space<vmem>>, vector<8x8xf32>
      tpu.vector_store %arg2[%c0_11, %c0_12], %13 {strides = array<i32>} : memref<8x8xf32, #tpu.memory_space<vmem>>, vector<8x8xf32>,
    } else {
    }
    return
  }
  func.func @transform_0(%arg0: i32) -> (i32, i32) {
    %c0_i32 = arith.constant 0 : i32
    %c0_i32_0 = arith.constant 0 : i32
    return %c0_i32, %arg0 : i32, i32
  }
  func.func @transform_1(%arg0: i32) -> (i32, i32) {
    %c0_i32 = arith.constant 0 : i32
    %c0_i32_0 = arith.constant 0 : i32
    %c0_i32_1 = arith.constant 0 : i32
    return %c0_i32, %c0_i32_0 : i32, i32
  }
}

</mosaic_0001>

<bundles_post_ra>
// kernel: tpu_custom_call.1
= control target key start
LH: loop header
LB: loop body
LE: loop exit
PB: predicated region body
PF: predicated region fallthrough
CT: control target
= control target key end

     0   :  { %6 = vsyncpa [#allocation4], 0  ;;  %s175_s0 = inlined_call_operand.hbm [shape: f32[8,256], index: 0, kind: input, shape index: {}]   ;;  %s176_s1 = inlined_call_operand.hbm [shape: f32[8,8], index: 1, kind: output, shape index: {}]  }
   0x1   :  { %7 = vsyncpa [#allocation5], 0  ;;  %s13_s8 = sshll.u32 %s175_s0, 4  ;;  %s153_s9 = smov [#allocation3]   ;;  %s14_s8 = int_to_ptr.hbm [resolvable:$true] %s13_s8 }
   0x2   :  { %s15_s10 = sshll.u32 %s153_s9, 4  ;;  %s16_s10 = int_to_ptr.vmem [resolvable:$true] %s15_s10 }
   0x3   :  { %18 = dma.hbm_to_vmem [thread:$0]  %s14_s8, 256, %s16_s10, [#allocation4]  }
   0x4   :  { %149 = dma.done.wait [#allocation4], 256  }
   0x5   :  { %150 = vsyncadd [#allocation4], 4294967040  ;;  %v29_v0 = vld [vmem:[#allocation3] sm:$0xff]  ;;  %v30_v1 = vld [vmem:[#allocation3 + $0x8] sm:$0xff]  ;;  %vm27_vm0 = vcmask 64512   ;;  %v154_v2 = vmov 0.0  }
   0x6   :  { %47 = vmatpush.xpose.msra.mxu0 %v29_v0  ;;  %67 = vmatpush.xpose.msra.mxu1 %v30_v1  ;;  %28 = vst.msk [vmem:[#allocation2] sm:$0xff] %vm27_vm0, %v154_v2  ;;  %s155_s0 = smov [#allocation6]   ;;  %s88_s14 = sshll.u32 %s176_s1, 4  ;;  %s89_s14 = int_to_ptr.hbm [resolvable:$true] %s88_s14 }
   0x7   :  { %s86_s11 = sshll.u32 %s155_s0, 4  ;;  %s87_s11 = int_to_ptr.vmem [resolvable:$true] %s86_s11 }
   0x9   :  { %48 = vmatmul.f32.vlgmr.msra.gmra.mxu0 %v29_v0  ;;  %68 = vmatmul.f32.vlgmr.msra.gmra.mxu1 %v30_v1 }
   0xd   :  { %v31_v4 = vld [vmem:[#allocation2] sm:$0xff] }
  0x86   :  { %v49_v3 = vpop.f32.mrf.mxu0  ;;  %v69_v5 = vpop.f32.mrf.mxu1 }
  0x87   :  { %v70_v6 = vadd.f32 %v69_v5, %v49_v3 }
  0x89   :  { %v72_v7 = vadd.f32 %v70_v6, %v31_v4 }
  0x8b   :  { %74 = vst.msk [vmem:[#allocation2] sm:$0xff] %vm27_vm0, %v72_v7 }
  0x92   :  { %v78_v8 = vld [vmem:[#allocation2] sm:$0xff] }
  0x93   :  { %v79_v9 = vmul.f32 0.00048828125, %v78_v8 }
  0x95   :  { %80 = vst.msk [vmem:[#allocation6] sm:$0xff] %vm27_vm0, %v79_v9 }
  0x96   :  { %91 = dma.vmem_to_hbm [thread:$0]  %s87_s11, 128, %s89_s14, [#allocation5]  }
  0x97   :  { %151 = dma.done.wait [#allocation5], 128  }
  0x98   :  { %152 = vsyncadd [#allocation5], 4294967168 }
  0x99   :  { %96 = vsyncpa [#allocation4], 1 }
  0x9a   :  { %97 = vsyncpa [#allocation5], 1 }

</bundles_post_ra>
